<compile_context>
chip_gen: v7x
topology: tpu7x:2x2x1
jax: 0.10.0
libtpu: 0.0.40
codegen_flags: <defaults>
</compile_context>

<pallas_src>
import functools

import jax
import jax.numpy as jnp
from jax.experimental import pallas as pl
from jax.experimental.pallas import tpu as pltpu


def _mlp_kernel(x_ref, w1_ref, b1_ref, w2_ref, b2_ref, w3_ref, b3_ref, o_ref,
                *, approx_sigmoid):
    """Fused ClassifierA forward for one batch tile.

    Matmuls run on the MXU in the weight dtype (bf16 when params were prepared
    with bf16) with f32 accumulation; bias add / ReLU / sigmoid stay f32.
    """
    # Cast the f32 input tile to the MXU compute dtype in-kernel (free filler
    # under the DMA; explicit so an f32 x bf16 dot is never silently promoted).
    x = x_ref[...].astype(w1_ref.dtype)

    # fc1 + ReLU
    h1 = jnp.dot(x, w1_ref[...], preferred_element_type=jnp.float32) + b1_ref[...]
    h1 = jnp.maximum(h1, 0.0)

    # TODO(synk): nn.Dropout(p=0.25) is identity in eval/inference mode;
    # training-mode stochastic masking (pltpu.prng_random_bits) not implemented.

    # fc2 + ReLU
    h2 = jnp.dot(h1.astype(w2_ref.dtype), w2_ref[...],
                 preferred_element_type=jnp.float32) + b2_ref[...]
    h2 = jnp.maximum(h2, 0.0)

    # fc3 + sigmoid ( = 1 / (1 + exp(-z)); exp on EUP, reciprocal off the VALU )
    logits = jnp.dot(h2.astype(w3_ref.dtype), w3_ref[...],
                     preferred_element_type=jnp.float32) + b3_ref[...]
    sig = pl.reciprocal(1.0 + jnp.exp(-logits), approx=approx_sigmoid)
    o_ref[...] = sig.astype(o_ref.dtype)


def _auto_block_b(B, requested):
    """Pick a batch tile: big (amortize per-step overhead), multiple of 8,
    and split in two for large batches so a 2-TC chip (v7x) keeps both cores busy."""
    if requested is None:
        requested = 2048
    b8 = ((B + 7) // 8) * 8
    bb = min(requested, b8)
    if bb >= b8 and B >= 512:  # whole batch would be a single block -> halve it
        bb = ((pl.cdiv(B, 2) + 7) // 8) * 8
    return max(8, bb)


@functools.partial(jax.jit, static_argnames=("block_b",))
def classifier_a_forward(x, w1, b1, w2, b2, w3, b3, *, block_b=None):
    """x: (B, input_dim) f32.  Weights may be f32 or bf16 (see prepare_params).
    Returns (B, num_classes) f32 sigmoid probabilities."""
    B, D = x.shape
    H1 = w1.shape[1]
    H2 = w2.shape[1]
    C = w3.shape[1]

    bb = _auto_block_b(B, block_b)
    grid = (pl.cdiv(B, bb),)

    approx_sigmoid = (w1.dtype != jnp.float32)
    kernel = functools.partial(_mlp_kernel, approx_sigmoid=approx_sigmoid)

    itemsize = lambda a: a.size * a.dtype.itemsize
    cost = pl.CostEstimate(
        flops=2 * B * (D * H1 + H1 * H2 + H2 * C),
        transcendentals=B * C,
        bytes_accessed=(itemsize(x) + itemsize(w1) + itemsize(b1)
                        + itemsize(w2) + itemsize(b2) + itemsize(w3)
                        + itemsize(b3) + B * C * 4),
    )

    out = pl.pallas_call(
        kernel,
        out_shape=jax.ShapeDtypeStruct((B, C), jnp.float32),
        grid_spec=pltpu.PrefetchScalarGridSpec(
            num_scalar_prefetch=0,
            grid=grid,
            in_specs=[
                pl.BlockSpec((bb, D), lambda i: (i, 0)),    # x tile (partial last block ok)
                pl.BlockSpec((D, H1), lambda i: (0, 0)),    # W1 (resident, no re-DMA)
                pl.BlockSpec((1, H1), lambda i: (0, 0)),    # b1
                pl.BlockSpec((H1, H2), lambda i: (0, 0)),   # W2
                pl.BlockSpec((1, H2), lambda i: (0, 0)),    # b2
                pl.BlockSpec((H2, C), lambda i: (0, 0)),    # W3 (unpadded: C == full dim)
                pl.BlockSpec((1, C), lambda i: (0, 0)),     # b3
            ],
            out_specs=pl.BlockSpec((bb, C), lambda i: (i, 0)),
        ),
        compiler_params=pltpu.CompilerParams(
            dimension_semantics=("parallel",),
        ),
        cost_estimate=cost,
    )(x, w1, b1, w2, b2, w3, b3)

    return out


def init_params(key, input_dim, num_classes=10):
    """Deterministic PyTorch-style init: U(-1/sqrt(fan_in), 1/sqrt(fan_in))."""
    def linear(k, fan_in, fan_out):
        kw, kb = jax.random.split(k)
        bound = 1.0 / jnp.sqrt(fan_in)
        w = jax.random.uniform(kw, (fan_in, fan_out), jnp.float32, -bound, bound)
        b = jax.random.uniform(kb, (1, fan_out), jnp.float32, -bound, bound)
        return w, b

    k1, k2, k3 = jax.random.split(key, 3)
    w1, b1 = linear(k1, input_dim, 128)
    w2, b2 = linear(k2, 128, 128)
    w3, b3 = linear(k3, 128, num_classes)
    return w1, b1, w2, b2, w3, b3


def prepare_params(params, compute_dtype=jnp.bfloat16):
    """One-time prep: cast matmul weights to the MXU compute dtype (biases stay f32).
    Hoisted out of the jitted forward so it is not re-done on every call."""
    w1, b1, w2, b2, w3, b3 = params
    return (w1.astype(compute_dtype), b1,
            w2.astype(compute_dtype), b2,
            w3.astype(compute_dtype), b3)


def _reference(x, w1, b1, w2, b2, w3, b3):
    h1 = jnp.maximum(x @ w1 + b1, 0.0)
    h2 = jnp.maximum(h1 @ w2 + b2, 0.0)
    return jax.nn.sigmoid(h2 @ w3 + b3)


if __name__ == "__main__":
    key = jax.random.PRNGKey(0)
    kx, kx2, kp = jax.random.split(key, 3)

    input_dim, num_classes = 32, 10
    params = init_params(kp, input_dim, num_classes)

    # --- exact path: f32 weights, small batch ---------------------------------
    batch = 64
    x = jax.random.normal(kx, (batch, input_dim), jnp.float32)
    out_f32 = jax.block_until_ready(classifier_a_forward(x, *params))
    ref = _reference(x, *params)
    assert out_f32.shape == (batch, num_classes)
    assert jnp.allclose(out_f32, ref, atol=1e-5, rtol=1e-5), "f32 path mismatch"

    # --- bf16 MXU path with pre-cast weights; ragged batch exercises the
    #     partial-last-block (no batch pad) path --------------------------------
    bf16_params = prepare_params(params, jnp.bfloat16)
    batch2 = 50
    x2 = jax.random.normal(kx2, (batch2, input_dim), jnp.float32)
    out_bf16 = jax.block_until_ready(classifier_a_forward(x2, *bf16_params))
    ref2 = _reference(x2, *params)
    assert out_bf16.shape == (batch2, num_classes)
    assert jnp.allclose(out_bf16, ref2, atol=3e-2), "bf16 path mismatch vs reference"

    print("KERNEL_OK")
</pallas_src>

<mosaic_0001>
module attributes {stable_mosaic.version = 11 : i64} {
  func.func @_mlp_kernel(%arg0: i32, %arg1: memref<64x32xf32, #tpu.memory_space<vmem>>, %arg2: memref<32x128xf32, #tpu.memory_space<vmem>>, %arg3: memref<1x128xf32, #tpu.memory_space<vmem>>, %arg4: memref<128x128xf32, #tpu.memory_space<vmem>>, %arg5: memref<1x128xf32, #tpu.memory_space<vmem>>, %arg6: memref<128x10xf32, #tpu.memory_space<vmem>>, %arg7: memref<1x10xf32, #tpu.memory_space<vmem>>, %arg8: memref<64x10xf32, #tpu.memory_space<vmem>>) attributes {dimension_semantics = [#tpu.dimension_semantics<parallel>], iteration_bounds = array<i64: 1>, scalar_prefetch = 0 : i64, scratch_operands = 0 : i64, tpu.core_type = #tpu.core_type<tc>, window_params = [{transform_indices = @transform_0, window_bounds = array<i64: 64, 32>}, {pipeline_mode = #tpu.pipeline_mode<synchronous>, transform_indices = @transform_1, window_bounds = array<i64: 32, 128>}, {pipeline_mode = #tpu.pipeline_mode<synchronous>, transform_indices = @transform_2, window_bounds = array<i64: 1, 128>}, {pipeline_mode = #tpu.pipeline_mode<synchronous>, transform_indices = @transform_3, window_bounds = array<i64: 128, 128>}, {pipeline_mode = #tpu.pipeline_mode<synchronous>, transform_indices = @transform_4, window_bounds = array<i64: 1, 128>}, {pipeline_mode = #tpu.pipeline_mode<synchronous>, transform_indices = @transform_5, window_bounds = array<i64: 128, 10>}, {pipeline_mode = #tpu.pipeline_mode<synchronous>, transform_indices = @transform_6, window_bounds = array<i64: 1, 10>}, {transform_indices = @transform_7, window_bounds = array<i64: 64, 10>}]} {
    %c0 = arith.constant 0 : index
    %c0_0 = arith.constant 0 : index
    %0 = vector.load %arg1[%c0, %c0_0] : memref<64x32xf32, #tpu.memory_space<vmem>>, vector<64x32xf32>
    %c0_1 = arith.constant 0 : index
    %c0_2 = arith.constant 0 : index
    %1 = vector.load %arg2[%c0_1, %c0_2] : memref<32x128xf32, #tpu.memory_space<vmem>>, vector<32x128xf32>
    %cst = arith.constant dense<0.000000e+00> : vector<64x128xf32>
    %2 = tpu.matmul %0, %1, %cst {dimension_numbers = #tpu.dot_dimension_numbers<[1], [0], [0], [1], [0, 0, 1, 1], [], []>} : vector<64x32xf32>, vector<32x128xf32>, vector<64x128xf32> -> vector<64x128xf32>
    %c0_3 = arith.constant 0 : index
    %c0_4 = arith.constant 0 : index
    %3 = vector.load %arg3[%c0_3, %c0_4] : memref<1x128xf32, #tpu.memory_space<vmem>>, vector<1x128xf32>
    %4 = vector.broadcast %3 : vector<1x128xf32> to vector<64x128xf32>
    %5 = arith.addf %2, %4 : vector<64x128xf32>
    %cst_5 = arith.constant 0.000000e+00 : f32
    %6 = vector.broadcast %cst_5 : f32 to vector<64x128xf32>
    %7 = arith.maximumf %5, %6 : vector<64x128xf32>
    %c0_6 = arith.constant 0 : index
    %c0_7 = arith.constant 0 : index
    %8 = vector.load %arg4[%c0_6, %c0_7] : memref<128x128xf32, #tpu.memory_space<vmem>>, vector<128x128xf32>
    %cst_8 = arith.constant dense<0.000000e+00> : vector<64x128xf32>
    %9 = tpu.matmul %7, %8, %cst_8 {dimension_numbers = #tpu.dot_dimension_numbers<[1], [0], [0], [1], [0, 0, 1, 1], [], []>} : vector<64x128xf32>, vector<128x128xf32>, vector<64x128xf32> -> vector<64x128xf32>
    %c0_9 = arith.constant 0 : index
    %c0_10 = arith.constant 0 : index
    %10 = vector.load %arg5[%c0_9, %c0_10] : memref<1x128xf32, #tpu.memory_space<vmem>>, vector<1x128xf32>
    %11 = vector.broadcast %10 : vector<1x128xf32> to vector<64x128xf32>
    %12 = arith.addf %9, %11 : vector<64x128xf32>
    %cst_11 = arith.constant 0.000000e+00 : f32
    %13 = vector.broadcast %cst_11 : f32 to vector<64x128xf32>
    %14 = arith.maximumf %12, %13 : vector<64x128xf32>
    %c0_12 = arith.constant 0 : index
    %c0_13 = arith.constant 0 : index
    %15 = vector.load %arg6[%c0_12, %c0_13] : memref<128x10xf32, #tpu.memory_space<vmem>>, vector<128x10xf32>
    %cst_14 = arith.constant dense<0.000000e+00> : vector<64x10xf32>
    %16 = tpu.matmul %14, %15, %cst_14 {dimension_numbers = #tpu.dot_dimension_numbers<[1], [0], [0], [1], [0, 0, 1, 1], [], []>} : vector<64x128xf32>, vector<128x10xf32>, vector<64x10xf32> -> vector<64x10xf32>
    %c0_15 = arith.constant 0 : index
    %c0_16 = arith.constant 0 : index
    %17 = vector.load %arg7[%c0_15, %c0_16] : memref<1x10xf32, #tpu.memory_space<vmem>>, vector<1x10xf32>
    %18 = vector.broadcast %17 : vector<1x10xf32> to vector<64x10xf32>
    %19 = arith.addf %16, %18 : vector<64x10xf32>
    %cst_17 = arith.constant 0.000000e+00 : f32
    %20 = vector.broadcast %cst_17 : f32 to vector<64x10xf32>
    %21 = arith.subf %20, %19 : vector<64x10xf32>
    %22 = math.exp %21 : vector<64x10xf32>
    %cst_18 = arith.constant 1.000000e+00 : f32
    %23 = vector.broadcast %cst_18 : f32 to vector<64x10xf32>
    %24 = arith.addf %23, %22 : vector<64x10xf32>
    %25 = tpu.reciprocal %24 : vector<64x10xf32> -> vector<64x10xf32>
    %c0_19 = arith.constant 0 : index
    %c0_20 = arith.constant 0 : index
    %26 = vector.load %arg8[%c0_19, %c0_20] : memref<64x10xf32, #tpu.memory_space<vmem>>, vector<64x10xf32>
    tpu.vector_store %arg8[%c0_19, %c0_20], %25 {strides = array<i32>} : memref<64x10xf32, #tpu.memory_space<vmem>>, vector<64x10xf32>,
    return
  }
  func.func @transform_0(%arg0: i32) -> (i32, i32) {
    %c0_i32 = arith.constant 0 : i32
    %c0_i32_0 = arith.constant 0 : i32
    return %arg0, %c0_i32 : i32, i32
  }
  func.func @transform_1(%arg0: i32) -> (i32, i32) {
    %c0_i32 = arith.constant 0 : i32
    %c0_i32_0 = arith.constant 0 : i32
    %c0_i32_1 = arith.constant 0 : i32
    return %c0_i32, %c0_i32_0 : i32, i32
  }
  func.func @transform_2(%arg0: i32) -> (i32, i32) {
    %c0_i32 = arith.constant 0 : i32
    %c0_i32_0 = arith.constant 0 : i32
    %c0_i32_1 = arith.constant 0 : i32
    return %c0_i32, %c0_i32_0 : i32, i32
  }
  func.func @transform_3(%arg0: i32) -> (i32, i32) {
    %c0_i32 = arith.constant 0 : i32
    %c0_i32_0 = arith.constant 0 : i32
    %c0_i32_1 = arith.constant 0 : i32
    return %c0_i32, %c0_i32_0 : i32, i32
  }
  func.func @transform_4(%arg0: i32) -> (i32, i32) {
    %c0_i32 = arith.constant 0 : i32
    %c0_i32_0 = arith.constant 0 : i32
    %c0_i32_1 = arith.constant 0 : i32
    return %c0_i32, %c0_i32_0 : i32, i32
  }
  func.func @transform_5(%arg0: i32) -> (i32, i32) {
    %c0_i32 = arith.constant 0 : i32
    %c0_i32_0 = arith.constant 0 : i32
    %c0_i32_1 = arith.constant 0 : i32
    return %c0_i32, %c0_i32_0 : i32, i32
  }
  func.func @transform_6(%arg0: i32) -> (i32, i32) {
    %c0_i32 = arith.constant 0 : i32
    %c0_i32_0 = arith.constant 0 : i32
    %c0_i32_1 = arith.constant 0 : i32
    return %c0_i32, %c0_i32_0 : i32, i32
  }
  func.func @transform_7(%arg0: i32) -> (i32, i32) {
    %c0_i32 = arith.constant 0 : i32
    %c0_i32_0 = arith.constant 0 : i32
    return %arg0, %c0_i32 : i32, i32
  }
}

</mosaic_0001>

<bundles_post_ra>
// kernel: classifier_a_forward.1
= control target key start
LH: loop header
LB: loop body
LE: loop exit
PB: predicated region body
PF: predicated region fallthrough
CT: control target
= control target key end

     0   :  { %vm45_vm0 = vcmask 261120   ;;  %vm487_vm1 = vcmask 80896   ;;  %s1004_s1 = inlined_call_operand.vmem [shape: f32[32,128], index: 1, kind: input, shape index: {}]   ;;  %s1005_s0 = inlined_call_operand.vmem [shape: f32[64,32], index: 0, kind: input, shape index: {}]   ;;  %s1006_s3 = inlined_call_operand.vmem [shape: f32[128,128], index: 3, kind: input, shape index: {}]   ;;  %s1007_s5 = inlined_call_operand.vmem [shape: f32[128,10], index: 5, kind: input, shape index: {}]   ;;  %s1008_s2 = inlined_call_operand.vmem [shape: f32[1,128], index: 2, kind: input, shape index: {}]   ;;  %s1009_s4 = inlined_call_operand.vmem [shape: f32[1,128], index: 4, kind: input, shape index: {}]   ;;  %s1010_s6 = inlined_call_operand.vmem [shape: f32[1,10], index: 6, kind: input, shape index: {}]   ;;  %s1011_s7 = inlined_call_operand.vmem [shape: f32[64,10], index: 7, kind: output, shape index: {}]  }
   0x1   :  { %v34_v0 = vld [vmem:[%s1004_s1] sm:$0xff]  ;;  %v35_v1 = vld [vmem:[%s1004_s1 + $0x8] sm:$0xff]  ;;  %v36_v2 = vld [vmem:[%s1004_s1 + $0x10] sm:$0xff] }
   0x2   :  { %v679_v3 = vpack.c.bf16 %v35_v1, %v34_v0  ;;  %v37_v4 = vld [vmem:[%s1004_s1 + $0x18] sm:$0xff]  ;;  %v26_v5 = vld [vmem:[%s1005_s0] sm:$0xff]  ;;  %v184_v8 = vld [vmem:[%s1006_s3 + $0x8] sm:$0xff] }
   0x3   :  { %v683_v6 = vpack.c.bf16 %v37_v4, %v36_v2  ;;  %579 = vmatprep.mubr.msk.f32.mxu0 %vm45_vm0, %v26_v5  ;;  %v183_v7 = vld [vmem:[%s1006_s3] sm:$0xff]  ;;  %v185_v9 = vld [vmem:[%s1006_s3 + $0x10] sm:$0xff]  ;;  %v186_v11 = vld [vmem:[%s1006_s3 + $0x18] sm:$0xff] }
   0x4   :  { %680 = vmatprep.subr.bf16.mxu0 %v679_v3  ;;  %v687_v10 = vpack.c.bf16 %v184_v8, %v183_v7  ;;  %v691_v12 = vpack.c.bf16 %v186_v11, %v185_v9  ;;  %v187_v13 = vld [vmem:[%s1006_s3 + $0x20] sm:$0xff]  ;;  %v188_v14 = vld [vmem:[%s1006_s3 + $0x28] sm:$0xff]  ;;  %v28_v16 = vld [vmem:[%s1005_s0 + $0x10] sm:$0xff] }
   0x5   :  { %682 = vmatpush3.bf16.msra.mxu0 %v679_v3  ;;  %v27_v15 = vld [vmem:[%s1005_s0 + $0x8] sm:$0xff]  ;;  %v695_v17 = vpack.c.bf16 %v188_v14, %v187_v13  ;;  %v189_v18 = vld [vmem:[%s1006_s3 + $0x30] sm:$0xff]  ;;  %v190_v19 = vld [vmem:[%s1006_s3 + $0x38] sm:$0xff] }
   0x6   :  { %684 = vmatprep.subr.bf16.mxu0 %v683_v6  ;;  %688 = vmatprep.subr.bf16.mxu1 %v687_v10  ;;  %v29_v20 = vld [vmem:[%s1005_s0 + $0x18] sm:$0xff]  ;;  %v30_v21 = vld [vmem:[%s1005_s0 + $0x20] sm:$0xff]  ;;  %v699_v22 = vpack.c.bf16 %v190_v19, %v189_v18  ;;  %v192_v24 = vld [vmem:[%s1006_s3 + $0x48] sm:$0xff] }
   0x7   :  { %690 = vmatpush3.bf16.msra.mxu1 %v687_v10  ;;  %v191_v23 = vld [vmem:[%s1006_s3 + $0x40] sm:$0xff]  ;;  %v31_v25 = vld [vmem:[%s1005_s0 + $0x28] sm:$0xff]  ;;  %v32_v26 = vld [vmem:[%s1005_s0 + $0x30] sm:$0xff] }
   0x8   :  { %692 = vmatprep.subr.bf16.mxu1 %v691_v12  ;;  %v703_v27 = vpack.c.bf16 %v192_v24, %v191_v23  ;;  %v193_v28 = vld [vmem:[%s1006_s3 + $0x50] sm:$0xff]  ;;  %v194_v29 = vld [vmem:[%s1006_s3 + $0x58] sm:$0xff]  ;;  %v195_v32 = vld [vmem:[%s1006_s3 + $0x60] sm:$0xff] }
   0x9   :  { %686 = vmatpush3.bf16.msra.mxu0 %v683_v6  ;;  %v33_v30 = vld [vmem:[%s1005_s0 + $0x38] sm:$0xff]  ;;  %v707_v31 = vpack.c.bf16 %v194_v29, %v193_v28  ;;  %v196_v33 = vld [vmem:[%s1006_s3 + $0x68] sm:$0xff]  ;;  %v197_v35 = vld [vmem:[%s1006_s3 + $0x70] sm:$0xff] }
   0xa   :  { %v711_v34 = vpack.c.bf16 %v196_v33, %v195_v32  ;;  %v198_v36 = vld [vmem:[%s1006_s3 + $0x78] sm:$0xff]  ;;  %v319_v38 = vld [vmem:[%s1007_s5] sm:$0xff]  ;;  %v320_v39 = vld [vmem:[%s1007_s5 + $0x8] sm:$0xff] }
   0xb   :  { %694 = vmatpush3.bf16.msra.mxu1 %v691_v12  ;;  %v715_v37 = vpack.c.bf16 %v198_v36, %v197_v35  ;;  %v321_v40 = vld [vmem:[%s1007_s5 + $0x10] sm:$0xff]  ;;  %v719_v41 = vpack.c.bf16 %v320_v39, %v319_v38  ;;  %v322_v42 = vld [vmem:[%s1007_s5 + $0x18] sm:$0xff]  ;;  %v323_v44 = vld [vmem:[%s1007_s5 + $0x20] sm:$0xff] }
   0xc   :  { %580 = vmatmul.mubr.msk.f32.vlgmr.msra.gmra.mrb[0].mxu0 %vm45_vm0, %v27_v15  ;;  %696 = vmatprep.subr.bf16.mxu1 %v695_v17  ;;  %v723_v43 = vpack.c.bf16 %v322_v42, %v321_v40  ;;  %v324_v45 = vld [vmem:[%s1007_s5 + $0x28] sm:$0xff]  ;;  %v325_v47 = vld [vmem:[%s1007_s5 + $0x30] sm:$0xff]  ;;  %v326_v48 = vld [vmem:[%s1007_s5 + $0x38] sm:$0xff] }
   0xd   :  { %582 = vmatprep.mubr.msk.f32.mxu0 %vm45_vm0, %v28_v16  ;;  %720 = vmatprep.subr.bf16.mxu0 %v719_v41  ;;  %v727_v46 = vpack.c.bf16 %v324_v45, %v323_v44  ;;  %v731_v49 = vpack.c.bf16 %v326_v48, %v325_v47  ;;  %v327_v50 = vld [vmem:[%s1007_s5 + $0x40] sm:$0xff]  ;;  %v328_v51 = vld [vmem:[%s1007_s5 + $0x48] sm:$0xff]  ;;  %v329_v53 = vld [vmem:[%s1007_s5 + $0x50] sm:$0xff] }
   0xe   :  { %722 = vmatpush3.bf16.msra.mxu0 %v719_v41  ;;  %v735_v52 = vpack.c.bf16 %v328_v51, %v327_v50  ;;  %v330_v54 = vld [vmem:[%s1007_s5 + $0x58] sm:$0xff]  ;;  %v331_v56 = vld [vmem:[%s1007_s5 + $0x60] sm:$0xff]  ;;  %v332_v57 = vld [vmem:[%s1007_s5 + $0x68] sm:$0xff] }
   0xf   :  { %698 = vmatpush3.bf16.msra.mxu1 %v695_v17  ;;  %724 = vmatprep.subr.bf16.mxu0 %v723_v43  ;;  %v739_v55 = vpack.c.bf16 %v330_v54, %v329_v53  ;;  %v743_v58 = vpack.c.bf16 %v332_v57, %v331_v56  ;;  %v500_v59 = vld [vmem:[%s1008_s2] ss:$0 sm:$0xff] }
  0x10   :  { %583 = vmatmul.mubr.msk.f32.gmra.mrb[2].mxu0 %vm45_vm0, %v29_v20  ;;  %700 = vmatprep.subr.bf16.mxu1 %v699_v22  ;;  %v333_v20 = vld [vmem:[%s1007_s5 + $0x70] sm:$0xff]  ;;  %v509_v23 = vld [vmem:[%s1009_s4] ss:$0 sm:$0xff] }
  0x11   :  { %585 = vmatprep.mubr.msk.f32.mxu0 %vm45_vm0, %v30_v21  ;;  %v334_v21 = vld [vmem:[%s1007_s5 + $0x78] sm:$0xff]  ;;  %v510_v48 = vld [vmem:[%s1010_s6] ss:$0 sm:$0xff] }
  0x12   :  { %726 = vmatpush3.bf16.msra.mxu0 %v723_v43 }
  0x13   :  { %702 = vmatpush3.bf16.msra.mxu1 %v699_v22  ;;  %728 = vmatprep.subr.bf16.mxu0 %v727_v46  ;;  %v747_v22 = vpack.c.bf16 %v334_v21, %v333_v20 }
  0x14   :  { %586 = vmatmul.mubr.msk.f32.gmra.mrb[4].mxu0 %vm45_vm0, %v31_v25  ;;  %704 = vmatprep.subr.bf16.mxu1 %v703_v27 }
  0x15   :  { %588 = vmatprep.mubr.msk.f32.mxu0 %vm45_vm0, %v32_v26 }
  0x16   :  { %730 = vmatpush3.bf16.msra.mxu0 %v727_v46 }
  0x17   :  { %706 = vmatpush3.bf16.msra.mxu1 %v703_v27  ;;  %732 = vmatprep.subr.bf16.mxu0 %v731_v49 }
  0x18   :  { %589 = vmatmul.mubr.msk.f32.gmra.mrb[6].mxu0 %vm45_vm0, %v33_v30  ;;  %708 = vmatprep.subr.bf16.mxu1 %v707_v31 }
  0x1a   :  { %734 = vmatpush3.bf16.msra.mxu0 %v731_v49 }
  0x1b   :  { %710 = vmatpush3.bf16.msra.mxu1 %v707_v31  ;;  %736 = vmatprep.subr.bf16.mxu0 %v735_v52 }
  0x1c   :  { %712 = vmatprep.subr.bf16.mxu1 %v711_v34 }
  0x1e   :  { %738 = vmatpush3.bf16.msra.mxu0 %v735_v52 }
  0x1f   :  { %714 = vmatpush3.bf16.msra.mxu1 %v711_v34  ;;  %740 = vmatprep.subr.bf16.mxu0 %v739_v55 }
  0x20   :  { %716 = vmatprep.subr.bf16.mxu1 %v715_v37 }
  0x22   :  { %742 = vmatpush3.bf16.msra.mxu0 %v739_v55 }
  0x23   :  { %718 = vmatpush3.bf16.msra.mxu1 %v715_v37  ;;  %744 = vmatprep.subr.bf16.mxu0 %v743_v58 }
  0x26   :  { %746 = vmatpush3.bf16.msra.mxu0 %v743_v58 }
  0x27   :  { %748 = vmatprep.subr.bf16.mxu0 %v747_v22 }
  0x2a   :  { %750 = vmatpush3.bf16.msra.mxu0 %v747_v22 }
  0xdf   :  { %v581_v60 = vpop.f32.mrb[0].mxu0 }
  0xe0   :  { %v142_v61 = vadd.f32 %v581_v60, %v500_v59  ;;  %v136_v62 = vpop.f32.mrb[1].mxu0 }
  0xe1   :  { %v137_v63 = vadd.f32 %v500_v59, %v136_v62 }
  0xe2   :  { %v176_v2 = vmax.f32 %v142_v61, 0.0 }
  0xe3   :  { %v584_v0 = vpop.f32.mrb[2].mxu0  ;;  %v175_v1 = vmax.f32 %v137_v63, 0.0 }
  0xe4   :  { %v152_v3 = vadd.f32 %v584_v0, %v500_v59  ;;  %v146_v4 = vpop.f32.mrb[3].mxu0 }
  0xe5   :  { %v147_v5 = vadd.f32 %v500_v59, %v146_v4  ;;  %623 = vmatprep.mubr.f32.mxu1 %v175_v1 }
  0xe6   :  { %624 = vmatmul.mubr.f32.vlgmr.msra.gmra.mrb[0].mxu1 %v176_v2  ;;  %v178_v8 = vmax.f32 %v152_v3, 0.0 }
  0xe7   :  { %v177_v6 = vmax.f32 %v147_v5, 0.0  ;;  %v587_v7 = vpop.f32.mrb[4].mxu0 }
  0xe8   :  { %v162_v9 = vadd.f32 %v587_v7, %v500_v59  ;;  %v156_v10 = vpop.f32.mrb[5].mxu0 }
  0xe9   :  { %v157_v11 = vadd.f32 %v500_v59, %v156_v10  ;;  %626 = vmatprep.mubr.f32.mxu1 %v177_v6 }
  0xea   :  { %627 = vmatmul.mubr.f32.gmra.mrb[2].mxu1 %v178_v8  ;;  %v180_v14 = vmax.f32 %v162_v9, 0.0 }
  0xeb   :  { %v179_v12 = vmax.f32 %v157_v11, 0.0  ;;  %v590_v13 = vpop.f32.mrb[6].mxu0 }
  0xec   :  { %v172_v15 = vadd.f32 %v590_v13, %v500_v59  ;;  %v166_v16 = vpop.f32.mrb[7].mxu0 }
  0xed   :  { %v167_v17 = vadd.f32 %v500_v59, %v166_v16  ;;  %629 = vmatprep.mubr.f32.mxu1 %v179_v12 }
  0xee   :  { %630 = vmatmul.mubr.f32.gmra.mrb[4].mxu1 %v180_v14  ;;  %v182_v19 = vmax.f32 %v172_v15, 0.0 }
  0xef   :  { %v181_v18 = vmax.f32 %v167_v17, 0.0 }
  0xf1   :  { %632 = vmatprep.mubr.f32.mxu1 %v181_v18 }
  0xf2   :  { %633 = vmatmul.mubr.f32.gmra.mrb[6].mxu1 %v182_v19 }
 0x1b9   :  { %v625_v24 = vpop.f32.mrb[0].mxu1 }
 0x1ba   :  { %v278_v25 = vadd.f32 %v625_v24, %v509_v23  ;;  %v272_v26 = vpop.f32.mrb[1].mxu1 }
 0x1bb   :  { %v273_v27 = vadd.f32 %v509_v23, %v272_v26 }
 0x1bc   :  { %v312_v30 = vmax.f32 %v278_v25, 0.0 }
 0x1bd   :  { %v311_v28 = vmax.f32 %v273_v27, 0.0  ;;  %v628_v29 = vpop.f32.mrb[2].mxu1 }
 0x1be   :  { %v288_v31 = vadd.f32 %v628_v29, %v509_v23  ;;  %v282_v32 = vpop.f32.mrb[3].mxu1 }
 0x1bf   :  { %v283_v33 = vadd.f32 %v509_v23, %v282_v32  ;;  %667 = vmatprep.mubr.f32.mxu0 %v311_v28 }
 0x1c0   :  { %668 = vmatmul.mubr.f32.vlgmr.msra.gmra.mrb[8].mxu0 %v312_v30  ;;  %v314_v36 = vmax.f32 %v288_v31, 0.0 }
 0x1c1   :  { %v313_v34 = vmax.f32 %v283_v33, 0.0  ;;  %v631_v35 = vpop.f32.mrb[4].mxu1 }
 0x1c2   :  { %v298_v37 = vadd.f32 %v631_v35, %v509_v23  ;;  %v292_v38 = vpop.f32.mrb[5].mxu1 }
 0x1c3   :  { %v293_v39 = vadd.f32 %v509_v23, %v292_v38  ;;  %670 = vmatprep.mubr.f32.mxu0 %v313_v34 }
 0x1c4   :  { %671 = vmatmul.mubr.f32.gmra.mrb[10].mxu0 %v314_v36  ;;  %v316_v42 = vmax.f32 %v298_v37, 0.0 }
 0x1c5   :  { %v315_v40 = vmax.f32 %v293_v39, 0.0  ;;  %v634_v41 = vpop.f32.mrb[6].mxu1 }
 0x1c6   :  { %v308_v43 = vadd.f32 %v634_v41, %v509_v23  ;;  %v302_v44 = vpop.f32.mrb[7].mxu1 }
 0x1c7   :  { %v303_v45 = vadd.f32 %v509_v23, %v302_v44  ;;  %673 = vmatprep.mubr.f32.mxu0 %v315_v40 }
 0x1c8   :  { %674 = vmatmul.mubr.f32.gmra.mrb[12].mxu0 %v316_v42  ;;  %v318_v47 = vmax.f32 %v308_v43, 0.0 }
 0x1c9   :  { %v317_v46 = vmax.f32 %v303_v45, 0.0 }
 0x1cb   :  { %676 = vmatprep.mubr.f32.mxu0 %v317_v46 }
 0x1cc   :  { %677 = vmatmul.mubr.f32.gmra.mrb[14].mxu0 %v318_v47 }
 0x293   :  { %v669_v49 = vpop.f32.mrb[8].mxu0 }
 0x294   :  { %v414_v50 = vadd.f32 %v669_v49, %v510_v48  ;;  %v408_v51 = vpop.f32.mrb[9].mxu0 }
 0x295   :  { %v409_v52 = vadd.f32 %v510_v48, %v408_v51 }
 0x296   :  { %v448_v53 = vsub.f32 0.0, %v414_v50 }
 0x297   :  { %v447_v54 = vsub.f32 0.0, %v409_v52  ;;  %v672_v55 = vpop.f32.mrb[10].mxu0 }
 0x298   :  { %v457_v56 = vmul.f32 1.442695, %v448_v53  ;;  %v424_v57 = vadd.f32 %v672_v55, %v510_v48  ;;  %v418_v58 = vpop.f32.mrb[11].mxu0 }
 0x299   :  { %v455_v59 = vmul.f32 1.442695, %v447_v54  ;;  %v419_v60 = vadd.f32 %v510_v48, %v418_v58 }
 0x29a   :  { %751 = vpow2.f32 %v457_v56  ;;  %v450_v61 = vsub.f32 0.0, %v424_v57 }
 0x29b   :  { %753 = vpow2.f32 %v455_v59  ;;  %v449_v62 = vsub.f32 0.0, %v419_v60  ;;  %v675_v63 = vpop.f32.mrb[12].mxu0 }
 0x29c   :  { %v461_v0 = vmul.f32 1.442695, %v450_v61  ;;  %v434_v1 = vadd.f32 %v675_v63, %v510_v48  ;;  %v428_v2 = vpop.f32.mrb[13].mxu0 }
 0x29d   :  { %v459_v3 = vmul.f32 1.442695, %v449_v62  ;;  %v429_v4 = vadd.f32 %v510_v48, %v428_v2 }
 0x29e   :  { %755 = vpow2.f32 %v461_v0  ;;  %v452_v5 = vsub.f32 0.0, %v434_v1 }
 0x29f   :  { %757 = vpow2.f32 %v459_v3  ;;  %v451_v6 = vsub.f32 0.0, %v429_v4  ;;  %v678_v7 = vpop.f32.mrb[14].mxu0 }
 0x2a0   :  { %v465_v8 = vmul.f32 1.442695, %v452_v5  ;;  %v444_v9 = vadd.f32 %v678_v7, %v510_v48  ;;  %v438_v10 = vpop.f32.mrb[15].mxu0 }
 0x2a1   :  { %v463_v11 = vmul.f32 1.442695, %v451_v6  ;;  %v439_v12 = vadd.f32 %v510_v48, %v438_v10 }
 0x2a2   :  { %759 = vpow2.f32 %v465_v8  ;;  %v454_v13 = vsub.f32 0.0, %v444_v9 }
 0x2a3   :  { %761 = vpow2.f32 %v463_v11  ;;  %v453_v14 = vsub.f32 0.0, %v439_v12 }
 0x2a4   :  { %v752_v15 = vpop.eup %751  ;;  %v469_v16 = vmul.f32 1.442695, %v454_v13 }
 0x2a5   :  { %v754_v17 = vpop.eup %753  ;;  %v472_v18 = vadd.f32 1.0, %v752_v15  ;;  %v467_v19 = vmul.f32 1.442695, %v453_v14 }
 0x2a6   :  { %v471_v20 = vadd.f32 1.0, %v754_v17  ;;  %763 = vpow2.f32 %v469_v16 }
 0x2a7   :  { %765 = vrcp.f32 %v472_v18 }
 0x2a8   :  { %v756_v21 = vpop.eup %755  ;;  %767 = vrcp.f32 %v471_v20 }
 0x2a9   :  { %v758_v22 = vpop.eup %757  ;;  %v474_v23 = vadd.f32 1.0, %v756_v21  ;;  %769 = vpow2.f32 %v467_v19 }
 0x2aa   :  { %v473_v24 = vadd.f32 1.0, %v758_v22 }
 0x2ab   :  { %771 = vrcp.f32 %v474_v23 }
 0x2ac   :  { %v760_v25 = vpop.eup %759  ;;  %773 = vrcp.f32 %v473_v24 }
 0x2ad   :  { %v762_v26 = vpop.eup %761  ;;  %v476_v27 = vadd.f32 1.0, %v760_v25 }
 0x2ae   :  { %v475_v28 = vadd.f32 1.0, %v762_v26 }
 0x2af   :  { %775 = vrcp.f32 %v476_v27 }
 0x2b0   :  { %v764_v29 = vpop.eup %763  ;;  %777 = vrcp.f32 %v475_v28 }
 0x2b1   :  { %v766_v30 = vpop.eup %765  ;;  %v478_v31 = vadd.f32 1.0, %v764_v29 }
 0x2b2   :  { %v768_v32 = vpop.eup %767  ;;  %489 = vst.msk [vmem:[%s1011_s7 + $0x8] sm:$0xff] %vm487_vm1, %v766_v30 }
 0x2b3   :  { %v770_v33 = vpop.eup %769  ;;  %488 = vst.msk [vmem:[%s1011_s7] sm:$0xff] %vm487_vm1, %v768_v32  ;;  %779 = vrcp.f32 %v478_v31 }
 0x2b4   :  { %v477_v34 = vadd.f32 1.0, %v770_v33 }
 0x2b5   :  { %v772_v35 = vpop.eup %771 }
 0x2b6   :  { %v774_v36 = vpop.eup %773  ;;  %491 = vst.msk [vmem:[%s1011_s7 + $0x18] sm:$0xff] %vm487_vm1, %v772_v35  ;;  %781 = vrcp.f32 %v477_v34 }
 0x2b7   :  { %490 = vst.msk [vmem:[%s1011_s7 + $0x10] sm:$0xff] %vm487_vm1, %v774_v36 }
 0x2b9   :  { %v776_v37 = vpop.eup %775 }
 0x2ba   :  { %v778_v38 = vpop.eup %777  ;;  %493 = vst.msk [vmem:[%s1011_s7 + $0x28] sm:$0xff] %vm487_vm1, %v776_v37 }
 0x2bb   :  { %492 = vst.msk [vmem:[%s1011_s7 + $0x20] sm:$0xff] %vm487_vm1, %v778_v38 }
 0x2bd   :  { %v780_v39 = vpop.eup %779 }
 0x2be   :  { %495 = vst.msk [vmem:[%s1011_s7 + $0x38] sm:$0xff] %vm487_vm1, %v780_v39 }
 0x2c0   :  { %v782_v40 = vpop.eup %781 }
 0x2c1   :  { %494 = vst.msk [vmem:[%s1011_s7 + $0x30] sm:$0xff] %vm487_vm1, %v782_v40 }

</bundles_post_ra>
